<compile_context>
chip_gen: v7x
topology: tpu7x:2x2x1
jax: 0.10.0
libtpu: 0.0.40
codegen_flags: <defaults>
</compile_context>

<pallas_src>
import math
from functools import partial

import jax
import jax.numpy as jnp
from jax import lax
from jax.experimental import pallas as pl
from jax.experimental.pallas import tpu as pltpu


# ---------------- Fused causal self-attention kernel (one batch per step) ----------------

def _csa_kernel(x_ref, wa_ref, wp_ref, o_ref, wmean_ref, *, n_head):
    # x_ref    : (T, C)   input slab for the current batch b
    # wa_ref   : (C, 3C)  c_attn weight (bf16, resident across the batch grid)
    # wp_ref   : (C, C)   c_proj weight (bf16, resident across the batch grid)
    # o_ref    : (T, C)   output slab for batch b
    # wmean_ref: (H, T, T) f32 accumulator — mean over batch of attention weights
    b = pl.program_id(0)
    T, C = x_ref.shape
    hd = C // n_head
    scale = 1.0 / math.sqrt(hd)

    # ---- c_attn projection: qkv = x @ W_attn (bf16 MXU operands, f32 acc) ----
    x_bf = x_ref[...].astype(jnp.bfloat16)
    qkv = jnp.dot(x_bf, wa_ref[...], preferred_element_type=jnp.float32)

    # Fold 1/sqrt(hd) into q; cast MXU operands once.
    q = (qkv[:, 0:C] * scale).astype(jnp.bfloat16)
    k = qkv[:, C:2 * C].astype(jnp.bfloat16)
    v = qkv[:, 2 * C:3 * C].astype(jnp.bfloat16)

    # Causal mask, hoisted out of the per-head loop.
    row = lax.broadcasted_iota(jnp.int32, (T, T), 0)
    col = lax.broadcasted_iota(jnp.int32, (T, T), 1)
    causal = col <= row

    @pl.when(b == 0)
    def _():
        wmean_ref[...] = jnp.zeros_like(wmean_ref)

    outs = []
    probs = []
    for h in range(n_head):  # small static unroll; all ops are 2-D, MXU-friendly
        qh = q[:, h * hd:(h + 1) * hd]
        kh = k[:, h * hd:(h + 1) * hd]
        vh = v[:, h * hd:(h + 1) * hd]

        # scores = q @ k^T via dot_general (contract last dims; no explicit .T)
        s = lax.dot_general(qh, kh, (((1,), (1,)), ((), ())),
                            preferred_element_type=jnp.float32)
        s = jnp.where(causal, s, -jnp.inf)

        m = jnp.max(s, axis=-1, keepdims=True)
        e = jnp.exp(s - m)
        denom = jnp.sum(e, axis=-1, keepdims=True)
        p = e * pl.reciprocal(denom, approx=True)   # softmax; divide on EUP
        # TODO(synk): attention dropout (torch.dropout p=0.2, train=True) omitted —
        # cannot match PyTorch RNG; behaves like eval mode (p=0.0).
        probs.append(p)
        outs.append(jnp.dot(p.astype(jnp.bfloat16), vh,
                            preferred_element_type=jnp.float32))

    # Single lane-dense accumulate of raw weights; divide-by-B in the epilogue.
    wmean_ref[...] += jnp.stack(probs, axis=0)

    # Concatenate heads into a lane-dense (T, C) slab, then output projection.
    attn = jnp.concatenate(outs, axis=-1).astype(jnp.bfloat16)
    o_ref[...] = jnp.dot(attn, wp_ref[...],
                         preferred_element_type=jnp.float32).astype(o_ref.dtype)
    # TODO(synk): resid_dropout (nn.Dropout(0.2)) omitted — identity in eval mode.

    @pl.when(b == pl.num_programs(0) - 1)
    def _():
        wmean_ref[...] *= 1.0 / pl.num_programs(0)


def causal_self_attention(x, w_attn, w_proj, n_head):
    # x: (B, T, C); w_attn: (C, 3C); w_proj: (C, C)
    B, T, C = x.shape
    three_c = w_attn.shape[1]
    hd = C // n_head

    # bf16 weights: halves weight DMA bytes and avoids per-step in-kernel casts
    # (MXU consumes bf16 operands anyway; accumulation stays f32).
    wa_bf = w_attn.astype(jnp.bfloat16)
    wp_bf = w_proj.astype(jnp.bfloat16)

    cost = pl.CostEstimate(
        flops=(2 * B * T * C * three_c            # c_attn
               + 4 * B * n_head * T * T * hd      # qk^T and pv
               + 2 * B * T * C * C),              # c_proj
        transcendentals=B * n_head * T * T,
        bytes_accessed=(4 * B * T * C * 2                      # x in, out
                        + 2 * (C * three_c + C * C)            # bf16 weights
                        + 4 * n_head * T * T))                 # mean weights

    out, attn_mean = pl.pallas_call(
        partial(_csa_kernel, n_head=n_head),
        out_shape=(jax.ShapeDtypeStruct((B, T, C), x.dtype),          # attn output
                   jax.ShapeDtypeStruct((n_head, T, T), jnp.float32)),  # mean weights
        grid=(B,),
        in_specs=[pl.BlockSpec((None, T, C), lambda b: (b, 0, 0)),     # x slab
                  pl.BlockSpec((C, three_c), lambda b: (0, 0)),        # W_attn (resident)
                  pl.BlockSpec((C, C), lambda b: (0, 0))],             # W_proj (resident)
        out_specs=(pl.BlockSpec((None, T, C), lambda b: (b, 0, 0)),
                   pl.BlockSpec((n_head, T, T), lambda b: (0, 0, 0))),
        compiler_params=pltpu.CompilerParams(
            # Batch is the reduction axis for the attention-weight mean, so it
            # must stay "arbitrary" (resident wmean accumulator across steps).
            dimension_semantics=("arbitrary",),
            vmem_limit_bytes=32 * 1024 * 1024),
        cost_estimate=cost,
    )(x, wa_bf, wp_bf)
    return out, attn_mean


# ---------------- Pure-JAX reference (for correctness check) ----------------

def _reference(x, w_attn, w_proj, n_head):
    B, T, C = x.shape
    hd = C // n_head
    qkv = x @ w_attn
    q, k, v = jnp.split(qkv, 3, axis=2)

    def heads(t):
        return t.reshape(B, T, n_head, hd).transpose(0, 2, 1, 3)

    q, k, v = heads(q), heads(k), heads(v)
    s = jnp.einsum('bhqd,bhkd->bhqk', q, k) / math.sqrt(hd)
    mask = jnp.tril(jnp.ones((T, T), bool))
    s = jnp.where(mask, s, -jnp.inf)
    w = jax.nn.softmax(s, axis=-1)
    o = jnp.einsum('bhqk,bhkd->bhqd', w, v)
    o = o.transpose(0, 2, 1, 3).reshape(B, T, C)
    return o @ w_proj, w.mean(axis=0)


if __name__ == "__main__":
    # Small shapes consistent with the module: B=2, T=8 (<= block_size),
    # n_embd=32, n_head=4 (n_embd % n_head == 0), bias=False.
    B, T, C, n_head = 2, 8, 32, 4

    key = jax.random.PRNGKey(0)
    kx, ka, kp = jax.random.split(key, 3)
    x = jax.random.normal(kx, (B, T, C), jnp.float32)

    # Deterministic Linear-style init: U(-1/sqrt(fan_in), 1/sqrt(fan_in)), no bias.
    bound = 1.0 / math.sqrt(C)
    w_attn = jax.random.uniform(ka, (C, 3 * C), jnp.float32, -bound, bound)
    w_proj = jax.random.uniform(kp, (C, C), jnp.float32, -bound, bound)

    out, attn_mean = jax.block_until_ready(
        causal_self_attention(x, w_attn, w_proj, n_head))

    assert out.shape == (B, T, C)
    assert attn_mean.shape == (n_head, T, T)
    assert bool(jnp.all(jnp.isfinite(out))) and bool(jnp.all(jnp.isfinite(attn_mean)))

    ref_out, ref_mean = _reference(x, w_attn, w_proj, n_head)
    assert jnp.allclose(out, ref_out, atol=1e-1, rtol=1e-1), \
        float(jnp.max(jnp.abs(out - ref_out)))
    assert jnp.allclose(attn_mean, ref_mean, atol=1e-1, rtol=1e-1), \
        float(jnp.max(jnp.abs(attn_mean - ref_mean)))

    print("KERNEL_OK")
</pallas_src>

<mosaic_0001>
module attributes {stable_mosaic.version = 11 : i64} {
  func.func @_csa_kernel(%arg0: i32, %arg1: memref<1x8x32xf32, #tpu.memory_space<vmem>>, %arg2: memref<32x96xbf16, #tpu.memory_space<vmem>>, %arg3: memref<32x32xbf16, #tpu.memory_space<vmem>>, %arg4: memref<1x8x32xf32, #tpu.memory_space<vmem>>, %arg5: memref<4x8x8xf32, #tpu.memory_space<vmem>>) attributes {dimension_semantics = [#tpu.dimension_semantics<arbitrary>], iteration_bounds = array<i64: 2>, scalar_prefetch = 0 : i64, scratch_operands = 0 : i64, tpu.core_type = #tpu.core_type<tc>, window_params = [{transform_indices = @transform_0, window_bounds = array<i64: 1, 8, 32>}, {pipeline_mode = #tpu.pipeline_mode<synchronous>, transform_indices = @transform_1, window_bounds = array<i64: 32, 96>}, {pipeline_mode = #tpu.pipeline_mode<synchronous>, transform_indices = @transform_2, window_bounds = array<i64: 32, 32>}, {transform_indices = @transform_3, window_bounds = array<i64: 1, 8, 32>}, {pipeline_mode = #tpu.pipeline_mode<synchronous>, transform_indices = @transform_4, window_bounds = array<i64: 4, 8, 8>}]} {
    %c0 = arith.constant 0 : index
    %c0_0 = arith.constant 0 : index
    %c0_1 = arith.constant 0 : index
    %0 = vector.load %arg1[%c0, %c0_0, %c0_1] : memref<1x8x32xf32, #tpu.memory_space<vmem>>, vector<1x8x32xf32>
    %1 = vector.shape_cast %0 : vector<1x8x32xf32> to vector<8x32xf32>
    %2 = arith.truncf %1 : vector<8x32xf32> to vector<8x32xbf16>
    %c0_2 = arith.constant 0 : index
    %c0_3 = arith.constant 0 : index
    %3 = vector.load %arg2[%c0_2, %c0_3] : memref<32x96xbf16, #tpu.memory_space<vmem>>, vector<32x96xbf16>
    %cst = arith.constant dense<0.000000e+00> : vector<8x96xf32>
    %4 = tpu.matmul %2, %3, %cst {dimension_numbers = #tpu.dot_dimension_numbers<[1], [0], [0], [1], [0, 0, 1, 1], [], []>} : vector<8x32xbf16>, vector<32x96xbf16>, vector<8x96xf32> -> vector<8x96xf32>
    %5 = vector.extract_strided_slice %4 {offsets = [0, 0], sizes = [8, 32], strides = [1, 1]} : vector<8x96xf32> to vector<8x32xf32>
    %cst_4 = arith.constant 0.353553385 : f32
    %6 = vector.broadcast %cst_4 : f32 to vector<8x32xf32>
    %7 = arith.mulf %5, %6 : vector<8x32xf32>
    %8 = arith.truncf %7 : vector<8x32xf32> to vector<8x32xbf16>
    %9 = vector.extract_strided_slice %4 {offsets = [0, 32], sizes = [8, 32], strides = [1, 1]} : vector<8x96xf32> to vector<8x32xf32>
    %10 = arith.truncf %9 : vector<8x32xf32> to vector<8x32xbf16>
    %11 = vector.extract_strided_slice %4 {offsets = [0, 64], sizes = [8, 32], strides = [1, 1]} : vector<8x96xf32> to vector<8x32xf32>
    %12 = arith.truncf %11 : vector<8x32xf32> to vector<8x32xbf16>
    %13 = tpu.iota {dimensions = array<i32: 0>} : vector<8x8xi32>
    %14 = tpu.iota {dimensions = array<i32: 1>} : vector<8x8xi32>
    %15 = arith.cmpi sle, %14, %13 : vector<8x8xi32>
    %c0_i32 = arith.constant 0 : i32
    %16 = arith.cmpi eq, %arg0, %c0_i32 : i32
    %17 = arith.extui %16 : i1 to i32
    %c0_i32_5 = arith.constant 0 : i32
    %18 = arith.cmpi ne, %17, %c0_i32_5 : i32
    scf.if %18 {
      %cst_39 = arith.constant 0.000000e+00 : f32
      %109 = vector.broadcast %cst_39 : f32 to vector<4x8x8xf32>
      %c0_40 = arith.constant 0 : index
      %c0_41 = arith.constant 0 : index
      %c0_42 = arith.constant 0 : index
      %110 = vector.load %arg5[%c0_40, %c0_41, %c0_42] : memref<4x8x8xf32, #tpu.memory_space<vmem>>, vector<4x8x8xf32>
      tpu.vector_store %arg5[%c0_40, %c0_41, %c0_42], %109 {strides = array<i32>} : memref<4x8x8xf32, #tpu.memory_space<vmem>>, vector<4x8x8xf32>,
    } else {
    }
    %19 = vector.extract_strided_slice %8 {offsets = [0, 0], sizes = [8, 8], strides = [1, 1]} : vector<8x32xbf16> to vector<8x8xbf16>
    %20 = vector.extract_strided_slice %10 {offsets = [0, 0], sizes = [8, 8], strides = [1, 1]} : vector<8x32xbf16> to vector<8x8xbf16>
    %21 = vector.extract_strided_slice %12 {offsets = [0, 0], sizes = [8, 8], strides = [1, 1]} : vector<8x32xbf16> to vector<8x8xbf16>
    %cst_6 = arith.constant dense<0.000000e+00> : vector<8x8xf32>
    %22 = tpu.matmul %19, %20, %cst_6 {dimension_numbers = #tpu.dot_dimension_numbers<[1], [1], [0], [0], [0, 0, 1, 0], [], []>} : vector<8x8xbf16>, vector<8x8xbf16>, vector<8x8xf32> -> vector<8x8xf32>
    %cst_7 = arith.constant 0xFF800000 : f32
    %23 = vector.broadcast %cst_7 : f32 to vector<8x8xf32>
    %24 = arith.select %15, %22, %23 : vector<8x8xi1>, vector<8x8xf32>
    %cst_8 = arith.constant dense<0xFF800000> : vector<8xf32>
    %25 = vector.multi_reduction <maximumf>, %24, %cst_8 [1] : vector<8x8xf32> to vector<8xf32>
    %26 = vector.shape_cast %25 : vector<8xf32> to vector<8x1xf32>
    %27 = vector.broadcast %26 : vector<8x1xf32> to vector<8x8xf32>
    %28 = arith.subf %24, %27 : vector<8x8xf32>
    %29 = math.exp %28 : vector<8x8xf32>
    %cst_9 = arith.constant dense<0.000000e+00> : vector<8xf32>
    %30 = vector.multi_reduction <add>, %29, %cst_9 [1] : vector<8x8xf32> to vector<8xf32>
    %31 = vector.shape_cast %30 : vector<8xf32> to vector<8x1xf32>
    %32 = tpu.reciprocal %31 {approx = true} : vector<8x1xf32> -> vector<8x1xf32>
    %33 = vector.broadcast %32 : vector<8x1xf32> to vector<8x8xf32>
    %34 = arith.mulf %29, %33 : vector<8x8xf32>
    %35 = arith.truncf %34 : vector<8x8xf32> to vector<8x8xbf16>
    %cst_10 = arith.constant dense<0.000000e+00> : vector<8x8xf32>
    %36 = tpu.matmul %35, %21, %cst_10 {dimension_numbers = #tpu.dot_dimension_numbers<[1], [0], [0], [1], [0, 0, 1, 1], [], []>} : vector<8x8xbf16>, vector<8x8xbf16>, vector<8x8xf32> -> vector<8x8xf32>
    %37 = vector.extract_strided_slice %8 {offsets = [0, 8], sizes = [8, 8], strides = [1, 1]} : vector<8x32xbf16> to vector<8x8xbf16>
    %38 = vector.extract_strided_slice %10 {offsets = [0, 8], sizes = [8, 8], strides = [1, 1]} : vector<8x32xbf16> to vector<8x8xbf16>
    %39 = vector.extract_strided_slice %12 {offsets = [0, 8], sizes = [8, 8], strides = [1, 1]} : vector<8x32xbf16> to vector<8x8xbf16>
    %cst_11 = arith.constant dense<0.000000e+00> : vector<8x8xf32>
    %40 = tpu.matmul %37, %38, %cst_11 {dimension_numbers = #tpu.dot_dimension_numbers<[1], [1], [0], [0], [0, 0, 1, 0], [], []>} : vector<8x8xbf16>, vector<8x8xbf16>, vector<8x8xf32> -> vector<8x8xf32>
    %cst_12 = arith.constant 0xFF800000 : f32
    %41 = vector.broadcast %cst_12 : f32 to vector<8x8xf32>
    %42 = arith.select %15, %40, %41 : vector<8x8xi1>, vector<8x8xf32>
    %cst_13 = arith.constant dense<0xFF800000> : vector<8xf32>
    %43 = vector.multi_reduction <maximumf>, %42, %cst_13 [1] : vector<8x8xf32> to vector<8xf32>
    %44 = vector.shape_cast %43 : vector<8xf32> to vector<8x1xf32>
    %45 = vector.broadcast %44 : vector<8x1xf32> to vector<8x8xf32>
    %46 = arith.subf %42, %45 : vector<8x8xf32>
    %47 = math.exp %46 : vector<8x8xf32>
    %cst_14 = arith.constant dense<0.000000e+00> : vector<8xf32>
    %48 = vector.multi_reduction <add>, %47, %cst_14 [1] : vector<8x8xf32> to vector<8xf32>
    %49 = vector.shape_cast %48 : vector<8xf32> to vector<8x1xf32>
    %50 = tpu.reciprocal %49 {approx = true} : vector<8x1xf32> -> vector<8x1xf32>
    %51 = vector.broadcast %50 : vector<8x1xf32> to vector<8x8xf32>
    %52 = arith.mulf %47, %51 : vector<8x8xf32>
    %53 = arith.truncf %52 : vector<8x8xf32> to vector<8x8xbf16>
    %cst_15 = arith.constant dense<0.000000e+00> : vector<8x8xf32>
    %54 = tpu.matmul %53, %39, %cst_15 {dimension_numbers = #tpu.dot_dimension_numbers<[1], [0], [0], [1], [0, 0, 1, 1], [], []>} : vector<8x8xbf16>, vector<8x8xbf16>, vector<8x8xf32> -> vector<8x8xf32>
    %55 = vector.extract_strided_slice %8 {offsets = [0, 16], sizes = [8, 8], strides = [1, 1]} : vector<8x32xbf16> to vector<8x8xbf16>
    %56 = vector.extract_strided_slice %10 {offsets = [0, 16], sizes = [8, 8], strides = [1, 1]} : vector<8x32xbf16> to vector<8x8xbf16>
    %57 = vector.extract_strided_slice %12 {offsets = [0, 16], sizes = [8, 8], strides = [1, 1]} : vector<8x32xbf16> to vector<8x8xbf16>
    %cst_16 = arith.constant dense<0.000000e+00> : vector<8x8xf32>
    %58 = tpu.matmul %55, %56, %cst_16 {dimension_numbers = #tpu.dot_dimension_numbers<[1], [1], [0], [0], [0, 0, 1, 0], [], []>} : vector<8x8xbf16>, vector<8x8xbf16>, vector<8x8xf32> -> vector<8x8xf32>
    %cst_17 = arith.constant 0xFF800000 : f32
    %59 = vector.broadcast %cst_17 : f32 to vector<8x8xf32>
    %60 = arith.select %15, %58, %59 : vector<8x8xi1>, vector<8x8xf32>
    %cst_18 = arith.constant dense<0xFF800000> : vector<8xf32>
    %61 = vector.multi_reduction <maximumf>, %60, %cst_18 [1] : vector<8x8xf32> to vector<8xf32>
    %62 = vector.shape_cast %61 : vector<8xf32> to vector<8x1xf32>
    %63 = vector.broadcast %62 : vector<8x1xf32> to vector<8x8xf32>
    %64 = arith.subf %60, %63 : vector<8x8xf32>
    %65 = math.exp %64 : vector<8x8xf32>
    %cst_19 = arith.constant dense<0.000000e+00> : vector<8xf32>
    %66 = vector.multi_reduction <add>, %65, %cst_19 [1] : vector<8x8xf32> to vector<8xf32>
    %67 = vector.shape_cast %66 : vector<8xf32> to vector<8x1xf32>
    %68 = tpu.reciprocal %67 {approx = true} : vector<8x1xf32> -> vector<8x1xf32>
    %69 = vector.broadcast %68 : vector<8x1xf32> to vector<8x8xf32>
    %70 = arith.mulf %65, %69 : vector<8x8xf32>
    %71 = arith.truncf %70 : vector<8x8xf32> to vector<8x8xbf16>
    %cst_20 = arith.constant dense<0.000000e+00> : vector<8x8xf32>
    %72 = tpu.matmul %71, %57, %cst_20 {dimension_numbers = #tpu.dot_dimension_numbers<[1], [0], [0], [1], [0, 0, 1, 1], [], []>} : vector<8x8xbf16>, vector<8x8xbf16>, vector<8x8xf32> -> vector<8x8xf32>
    %73 = vector.extract_strided_slice %8 {offsets = [0, 24], sizes = [8, 8], strides = [1, 1]} : vector<8x32xbf16> to vector<8x8xbf16>
    %74 = vector.extract_strided_slice %10 {offsets = [0, 24], sizes = [8, 8], strides = [1, 1]} : vector<8x32xbf16> to vector<8x8xbf16>
    %75 = vector.extract_strided_slice %12 {offsets = [0, 24], sizes = [8, 8], strides = [1, 1]} : vector<8x32xbf16> to vector<8x8xbf16>
    %cst_21 = arith.constant dense<0.000000e+00> : vector<8x8xf32>
    %76 = tpu.matmul %73, %74, %cst_21 {dimension_numbers = #tpu.dot_dimension_numbers<[1], [1], [0], [0], [0, 0, 1, 0], [], []>} : vector<8x8xbf16>, vector<8x8xbf16>, vector<8x8xf32> -> vector<8x8xf32>
    %cst_22 = arith.constant 0xFF800000 : f32
    %77 = vector.broadcast %cst_22 : f32 to vector<8x8xf32>
    %78 = arith.select %15, %76, %77 : vector<8x8xi1>, vector<8x8xf32>
    %cst_23 = arith.constant dense<0xFF800000> : vector<8xf32>
    %79 = vector.multi_reduction <maximumf>, %78, %cst_23 [1] : vector<8x8xf32> to vector<8xf32>
    %80 = vector.shape_cast %79 : vector<8xf32> to vector<8x1xf32>
    %81 = vector.broadcast %80 : vector<8x1xf32> to vector<8x8xf32>
    %82 = arith.subf %78, %81 : vector<8x8xf32>
    %83 = math.exp %82 : vector<8x8xf32>
    %cst_24 = arith.constant dense<0.000000e+00> : vector<8xf32>
    %84 = vector.multi_reduction <add>, %83, %cst_24 [1] : vector<8x8xf32> to vector<8xf32>
    %85 = vector.shape_cast %84 : vector<8xf32> to vector<8x1xf32>
    %86 = tpu.reciprocal %85 {approx = true} : vector<8x1xf32> -> vector<8x1xf32>
    %87 = vector.broadcast %86 : vector<8x1xf32> to vector<8x8xf32>
    %88 = arith.mulf %83, %87 : vector<8x8xf32>
    %89 = arith.truncf %88 : vector<8x8xf32> to vector<8x8xbf16>
    %cst_25 = arith.constant dense<0.000000e+00> : vector<8x8xf32>
    %90 = tpu.matmul %89, %75, %cst_25 {dimension_numbers = #tpu.dot_dimension_numbers<[1], [0], [0], [1], [0, 0, 1, 1], [], []>} : vector<8x8xbf16>, vector<8x8xbf16>, vector<8x8xf32> -> vector<8x8xf32>
    %c0_26 = arith.constant 0 : index
    %c0_27 = arith.constant 0 : index
    %c0_28 = arith.constant 0 : index
    %91 = vector.load %arg5[%c0_26, %c0_27, %c0_28] : memref<4x8x8xf32, #tpu.memory_space<vmem>>, vector<4x8x8xf32>
    %92 = vector.shape_cast %34 : vector<8x8xf32> to vector<1x8x8xf32>
    %93 = vector.shape_cast %52 : vector<8x8xf32> to vector<1x8x8xf32>
    %94 = vector.shape_cast %70 : vector<8x8xf32> to vector<1x8x8xf32>
    %95 = vector.shape_cast %88 : vector<8x8xf32> to vector<1x8x8xf32>
    %96 = tpu.concatenate %92, %93, %94, %95 in 0 : vector<1x8x8xf32>, vector<1x8x8xf32>, vector<1x8x8xf32>, vector<1x8x8xf32> -> vector<4x8x8xf32>
    %97 = arith.addf %91, %96 : vector<4x8x8xf32>
    %c0_29 = arith.constant 0 : index
    %c0_30 = arith.constant 0 : index
    %c0_31 = arith.constant 0 : index
    %98 = vector.load %arg5[%c0_29, %c0_30, %c0_31] : memref<4x8x8xf32, #tpu.memory_space<vmem>>, vector<4x8x8xf32>
    tpu.vector_store %arg5[%c0_29, %c0_30, %c0_31], %97 {strides = array<i32>} : memref<4x8x8xf32, #tpu.memory_space<vmem>>, vector<4x8x8xf32>,
    %99 = tpu.concatenate %36, %54, %72, %90 in 1 : vector<8x8xf32>, vector<8x8xf32>, vector<8x8xf32>, vector<8x8xf32> -> vector<8x32xf32>
    %100 = arith.truncf %99 : vector<8x32xf32> to vector<8x32xbf16>
    %c0_32 = arith.constant 0 : index
    %c0_33 = arith.constant 0 : index
    %101 = vector.load %arg3[%c0_32, %c0_33] : memref<32x32xbf16, #tpu.memory_space<vmem>>, vector<32x32xbf16>
    %cst_34 = arith.constant dense<0.000000e+00> : vector<8x32xf32>
    %102 = tpu.matmul %100, %101, %cst_34 {dimension_numbers = #tpu.dot_dimension_numbers<[1], [0], [0], [1], [0, 0, 1, 1], [], []>} : vector<8x32xbf16>, vector<32x32xbf16>, vector<8x32xf32> -> vector<8x32xf32>
    %c0_35 = arith.constant 0 : index
    %c0_36 = arith.constant 0 : index
    %c0_37 = arith.constant 0 : index
    %103 = vector.load %arg4[%c0_35, %c0_36, %c0_37] : memref<1x8x32xf32, #tpu.memory_space<vmem>>, vector<1x8x32xf32>
    %104 = vector.shape_cast %103 : vector<1x8x32xf32> to vector<8x32xf32>
    %105 = vector.shape_cast %102 : vector<8x32xf32> to vector<1x8x32xf32>
    tpu.vector_store %arg4[%c0_35, %c0_36, %c0_37], %105 {strides = array<i32>} : memref<1x8x32xf32, #tpu.memory_space<vmem>>, vector<1x8x32xf32>,
    %c1_i32 = arith.constant 1 : i32
    %106 = arith.cmpi eq, %arg0, %c1_i32 : i32
    %107 = arith.extui %106 : i1 to i32
    %c0_i32_38 = arith.constant 0 : i32
    %108 = arith.cmpi ne, %107, %c0_i32_38 : i32
    scf.if %108 {
      %c0_39 = arith.constant 0 : index
      %c0_40 = arith.constant 0 : index
      %c0_41 = arith.constant 0 : index
      %109 = vector.load %arg5[%c0_39, %c0_40, %c0_41] : memref<4x8x8xf32, #tpu.memory_space<vmem>>, vector<4x8x8xf32>
      %cst_42 = arith.constant 5.000000e-01 : f32
      %110 = vector.broadcast %cst_42 : f32 to vector<4x8x8xf32>
      %111 = arith.mulf %109, %110 : vector<4x8x8xf32>
      %c0_43 = arith.constant 0 : index
      %c0_44 = arith.constant 0 : index
      %c0_45 = arith.constant 0 : index
      %112 = vector.load %arg5[%c0_43, %c0_44, %c0_45] : memref<4x8x8xf32, #tpu.memory_space<vmem>>, vector<4x8x8xf32>
      tpu.vector_store %arg5[%c0_43, %c0_44, %c0_45], %111 {strides = array<i32>} : memref<4x8x8xf32, #tpu.memory_space<vmem>>, vector<4x8x8xf32>,
    } else {
    }
    return
  }
  func.func @transform_0(%arg0: i32) -> (i32, i32, i32) {
    %c0_i32 = arith.constant 0 : i32
    %c0_i32_0 = arith.constant 0 : i32
    %c0_i32_1 = arith.constant 0 : i32
    return %arg0, %c0_i32, %c0_i32_0 : i32, i32, i32
  }
  func.func @transform_1(%arg0: i32) -> (i32, i32) {
    %c0_i32 = arith.constant 0 : i32
    %c0_i32_0 = arith.constant 0 : i32
    %c0_i32_1 = arith.constant 0 : i32
    return %c0_i32, %c0_i32_0 : i32, i32
  }
  func.func @transform_2(%arg0: i32) -> (i32, i32) {
    %c0_i32 = arith.constant 0 : i32
    %c0_i32_0 = arith.constant 0 : i32
    %c0_i32_1 = arith.constant 0 : i32
    return %c0_i32, %c0_i32_0 : i32, i32
  }
  func.func @transform_3(%arg0: i32) -> (i32, i32, i32) {
    %c0_i32 = arith.constant 0 : i32
    %c0_i32_0 = arith.constant 0 : i32
    %c0_i32_1 = arith.constant 0 : i32
    return %arg0, %c0_i32, %c0_i32_0 : i32, i32, i32
  }
  func.func @transform_4(%arg0: i32) -> (i32, i32, i32) {
    %c0_i32 = arith.constant 0 : i32
    %c0_i32_0 = arith.constant 0 : i32
    %c0_i32_1 = arith.constant 0 : i32
    %c0_i32_2 = arith.constant 0 : i32
    return %c0_i32, %c0_i32_0, %c0_i32_1 : i32, i32, i32
  }
}

</mosaic_0001>

<bundles_post_ra>
// kernel: tpu_custom_call.1
= control target key start
LH: loop header
LB: loop body
LE: loop exit
PB: predicated region body
PF: predicated region fallthrough
CT: control target
= control target key end

     0   :  { %10 = vsyncpa [#allocation3], 0  ;;  %s1827_s0 = inlined_call_operand.hbm [shape: f32[2,8,32], index: 0, kind: input, shape index: {}]   ;;  %s1828_s1 = inlined_call_operand.hbm [shape: bf16[32,96], index: 1, kind: input, shape index: {}]   ;;  %s1829_s2 = inlined_call_operand.hbm [shape: bf16[32,32], index: 2, kind: input, shape index: {}]   ;;  %s1830_s3 = inlined_call_operand.hbm [shape: f32[2,8,32], index: 3, kind: output, shape index: {0}]   ;;  %s1831_s4 = inlined_call_operand.hbm [shape: f32[4,8,8], index: 4, kind: output, shape index: {1}]  }
   0x1   :  { %12 = vsyncpa [#allocation3 + $0x1], 0 }
   0x2   :  { %13 = vsyncpa [#allocation6], 0 }
   0x3   :  { %14 = vsyncpa [#allocation4], 0 }
   0x4   :  { %16 = vsyncpa [#allocation4 + $0x1], 0 }
   0x5   :  { %17 = vsyncpa [#allocation10], 0  ;;  %s1472_s15 = smov 0   ;;  %s1474_s16 = smov 0  }
   0x6   :  { %s1476_s17 = smov 0   ;;  %s1478_s18 = smov 0  }
   0x7 LB: > { %s1493_s19 = sadd.s32 4294967295, %s1420_s18   ;;  %s1000_s20 = sadd.s32 4294967294, %s1420_s18   ;;  %s1420_s18 = sphi %s1478_s18, %s1856_s18   ;;  %s1416_s17 = sphi %s1476_s17, %s1855_s17   ;;  %s1412_s16 = sphi %s1474_s16, %s1854_s16   ;;  %s1408_s15 = sphi %s1472_s15, %s1853_s15  }
   0x8   : > { %p43_p0 = scmp.ne.s32.totalorder %s1412_s16, %s1408_s15  ;;  %p1832_p1 = scmp.eq.s32.totalorder %s1493_s19, 0 }
   0x9   : > { %p115_p3 = scmp.eq.s32.totalorder %s1000_s20, 1  ;;  %p1001_p5 = scmp.ge.s32.totalorder %s1420_s18, 1 }
   0xa   : > { %p1502_p4 = por %p1832_p1, %p43_p0  ;;  %p143_p7 = scmp.lt.s32.totalorder %s1420_s18, 3 }
   0xb   : > { %p1507_p6 = por %p115_p3, %p43_p0  ;;  %s1422_s24 = smov [#allocation5]  }
   0xc   : > { %s1835_s21 = scalar_select %p1502_p4, 1, 0 }
   0xd   : > { %s1836_s22 = scalar_select %p1507_p6, 1, 0 }
   0xe   : > { %p1513_p9 = pnand %p1001_p5, %p143_p7  ;;  %s155_s25 = sshll.u32 %s1422_s24, 4  ;;  %s1517_s25 = int_to_ptr.vmem [resolvable:$true] %s155_s25 }
   0xf   : > { %s1423_s27 = smov [#allocation7]   ;;  %s1234_s5 = scalar_lea.hbm %s1828_s1, 256 }
  0x10   : > { %p1136_p10 = pneg %p1513_p9  ;;  %s168_s28 = sshll.u32 %s1423_s27, 4  ;;  %s1528_s28 = int_to_ptr.vmem [resolvable:$true] %s168_s28 }
  0x11   : > { %p1235_p13 = scmp.ne.s32.totalorder %s1828_s1, %s1234_s5  ;;  %p1241_p7 = scmp.lt.u32.totalorder %s1234_s5, %s1828_s1 }
  0x12   : > { %p1524_p12 = pnand %p1136_p10, %p1832_p1 }
  0x14   : > { %p1236_p0 = pneg %p1524_p12 }
  0x16   : > { %p1237_p3 = pnand %p1236_p0, %p1235_p13 }
  0x18   : > { %p1238_p5 = pneg %p1237_p3 }
  0x1a   : > { %p1243_p10 = pnand %p1241_p7, %p1238_p5 }
  0x1c   : > { %1246 = shalt.err (!%p1243_p10)
}
  0x1d   : > { %s1247_s10 = scalar_lea.vmem %s1517_s25, 256  ;;  %p1255_p2 = scmp.lt.s32.totalorder %s1517_s25, %s1517_s25 }
  0x1e   : > { %p1248_p11 = scmp.ne.s32.totalorder %s1517_s25, %s1247_s10  ;;  %p1256_p13 = scmp.lt.s32.totalorder %s1247_s10, %s1247_s10 }
  0x20   : > { %p1250_p8 = pnand %p1248_p11, %p1236_p0  ;;  %p1257_p3 = por %p1256_p13, %p1255_p2 }
  0x22   : > { %p1251_p1 = pneg %p1250_p8 }
  0x24   : > { %p1258_p6 = pnand %p1257_p3, %p1251_p1 }
  0x26   : > { %1261 = shalt.err (!%p1258_p6)
}
  0x27   : > { %s1424_s11 = smov 64   ;;  %s1425_s12 = smov 4  }
  0x28   : > { %1139 = dma.hbm_to_vmem [thread:$0]  (!%p1524_p12), %s1828_s1, 256, %s1517_s25, [#allocation6], %s1424_s11, %s1424_s11, %s1425_s12  }
  0x29   : > { %s1262_s27 = scalar_lea.hbm %s1829_s2, 256 }
  0x2a   : > { %p1263_p2 = scmp.ne.s32.totalorder %s1829_s2, %s1262_s27  ;;  %p1269_p8 = scmp.lt.u32.totalorder %s1262_s27, %s1829_s2 }
  0x2c   : > { %p1265_p1 = pnand %p1263_p2, %p1236_p0 }
  0x2e   : > { %p1266_p6 = pneg %p1265_p1 }
  0x30   : > { %p1271_p11 = pnand %p1269_p8, %p1266_p6 }
  0x32   : > { %1274 = shalt.err (!%p1271_p11)
}
  0x33   : > { %s1275_s25 = scalar_lea.vmem %s1528_s28, 256  ;;  %p1283_p13 = scmp.lt.s32.totalorder %s1528_s28, %s1528_s28 }
  0x34   : > { %p1276_p5 = scmp.ne.s32.totalorder %s1528_s28, %s1275_s25  ;;  %p1284_p3 = scmp.lt.s32.totalorder %s1275_s25, %s1275_s25 }
  0x36   : > { %p1278_p7 = pnand %p1276_p5, %p1236_p0  ;;  %p1285_p2 = por %p1284_p3, %p1283_p13 }
  0x38   : > { %p1279_p10 = pneg %p1278_p7 }
  0x3a   : > { %p1286_p1 = pnand %p1285_p2, %p1279_p10 }
  0x3c   : > { %1289 = shalt.err (!%p1286_p1)
}
  0x3d   : > { %1142 = dma.hbm_to_vmem [thread:$0]  (!%p1524_p12), %s1829_s2, 256, %s1528_s28, [#allocation6], %s1424_s11, %s1424_s11, %s1425_s12  }
  0x3e   : > { %s1583_s9 = sadd.s32 1, %s1420_s18   ;;  %s30_s26 = sadd.s32 1, %s1416_s17 }
  0x3f   : > { %s27_s10 = ssub.s32 %s1420_s18, %s1583_s9  ;;  %p37_p0 = scmp.ne.s32.totalorder %s1416_s17, %s1412_s16 }
  0x40   : > { %p28_p6 = scmp.eq.s32.totalorder %s27_s10, 0  ;;  %p38_p8 = scmp.eq.s32.totalorder %s1420_s18, 0 }
  0x41   : > { %p1839_p11 = scmp.eq.s32.totalorder %s1493_s19, 1  ;;  %p1153_p7 = scmp.lt.s32.totalorder %s1420_s18, 2 }
  0x42   : > { %s1599_s14 = scalar_select %p28_p6, %s1416_s17, %s30_s26  }
  0x43   : > { %p1593_p5 = por %p1839_p11, %p37_p0  ;;  %p39_p10 = por %p38_p8, %p37_p0 }
  0x44   : > { %s182_s20 = sand.u32 1, %s1416_s17   ;;  %s1006_s28 = sshll.u32 %s1420_s18, 7 }
  0x45   : > { %s1840_s13 = scalar_select %p1593_p5, 1, 0 }
  0x46   : > { %s1005_s24 = sshll.u32 %s182_s20, 3  ;;  %s1606_s27 = scalar_lea.hbm %s1827_s0, %s1006_s28 }
  0x47   : > { %s186_s29 = scalar_lea.vmem [#allocation2], %s1005_s24  ;;  %p1610_p12 = pnand %p1153_p7, %p39_p10 }
  0x48   : > { %s193_s30 = sshll.u32 %s186_s29, 4  ;;  %s183_s6 = scalar_lea.sflag [#allocation3], %s182_s20  ;;  %s1608_s30 = int_to_ptr.vmem [resolvable:$true] %s193_s30 }
  0x49   : > { %s1290_s25 = scalar_lea.hbm %s1606_s27, 128  ;;  %p1292_p3 = pneg %p1610_p12 }
  0x4a   : > { %p1291_p13 = scmp.ne.s32.totalorder %s1606_s27, %s1290_s25  ;;  %s1295_s26 = scalar_lea.hbm %s1827_s0, 256 }
  0x4b   : > { %p1296_p0 = scmp.lt.u32.totalorder %s1606_s27, %s1827_s0  ;;  %p1297_p6 = scmp.lt.u32.totalorder %s1295_s26, %s1290_s25 }
  0x4c   : > { %p1293_p2 = pnand %p1292_p3, %p1291_p13  ;;  %p1299_p11 = scmp.lt.u32.totalorder %s1290_s25, %s1606_s27 }
  0x4d   : > { %p1298_p8 = por %p1297_p6, %p1296_p0 }
  0x4e   : > { %p1294_p1 = pneg %p1293_p2 }
  0x4f   : > { %p1300_p7 = por %p1299_p11, %p1298_p8 }
  0x51   : > { %p1301_p10 = pnand %p1300_p7, %p1294_p1 }
  0x53   : > { %1304 = shalt.err (!%p1301_p10)
}
  0x54   : > { %s1305_s20 = scalar_lea.vmem %s1608_s30, 128  ;;  %s1426_s28 = smov [#allocation2]  }
  0x55   : > { %p1306_p13 = scmp.ne.s32.totalorder %s1608_s30, %s1305_s20  ;;  %s1310_s11 = sshll.u32 %s1426_s28, 4  ;;  %s1311_s11 = int_to_ptr.vmem [resolvable:$false] %s1310_s11 }
  0x56   : > { %s1312_s12 = scalar_lea.vmem %s1311_s11, 256  ;;  %p1313_p4 = scmp.lt.s32.totalorder %s1608_s30, %s1311_s11 }
  0x57   : > { %p1308_p2 = pnand %p1306_p13, %p1292_p3  ;;  %p1314_p0 = scmp.lt.s32.totalorder %s1312_s12, %s1305_s20 }
  0x59   : > { %p1309_p5 = pneg %p1308_p2  ;;  %p1315_p6 = por %p1314_p0, %p1313_p4 }
  0x5b   : > { %p1316_p8 = pnand %p1315_p6, %p1309_p5 }
  0x5d   : > { %1319 = shalt.err (!%p1316_p8)
}
  0x5e   : > { %1146 = dma.hbm_to_vmem [thread:$0]  (!%p1610_p12), %s1606_s27, 128, %s1608_s30, %s183_s6  }
  0x5f   : > { %202 = sbr.rel (%p1513_p9) target bundleno = 1643 (0x66b), region = 32  ;;  %s1642_s29 = sand.u32 (!%p1513_p9), 1, %s1412_s16  }
  0x60   : > { %s1008_s25 = sshll.u32 (!%p1513_p9), %s1642_s29, 3  ;;  %s205_s7 = scalar_lea.sflag (!%p1513_p9), [#allocation3], %s1642_s29 }
  0x61   : > { %s208_s8 = scalar_lea.vmem (!%p1513_p9), [#allocation2], %s1008_s25  ;;  %p1842_p4 = scmp.ne.s32.totalorder (!%p1513_p9), %s1835_s21, 0 }
  0x66   : > { %1391 = dma.done.wait (%p1842_p4), %s205_s7, 128  }
  0x67   : > { %1393 = vsyncadd (%p1842_p4), %s205_s7, 4294967168  ;;  %p1843_p5 = scmp.eq.s32.totalorder %s1493_s19, 0 }
  0x69   : > { %1395 = dma.done.wait (%p1843_p5), [#allocation6], 512   ;;  %p1844_p9 = pmov %p1843_p5 }
  0x6a   : > { %v1427_v0 = vmov 0.0   ;;  %vm1428_vm0 = vmmov 0   ;;  %v1214_v1 = vld [vmem:[#allocation5] sm:$0xff]   ;;  %v1215_v2 = vld [vmem:[#allocation5 + $0x8] sm:$0xff]   ;;  %v242_v3 = vld [vmem:[%s208_s8] sm:$0xff]  ;;  %vm260_vm1 = vcmask 261120   ;;  %v307_v5 = vlaneseq }
  0x6b   : > { %1397 = vsyncadd (%p1844_p9), [#allocation6], 4294966784  ;;  %1056 = vmatprep.subr.bf16.mxu0 %v1427_v0  ;;  %1060 = vmatprep.mubr.msk.bf16.mxu0 %vm1428_vm0, %v1427_v0  ;;  %v243_v4 = vpack.c.bf16 %v242_v3, %v242_v3  ;;  %s1671_s21 = scalar_lea.vmem [#allocation8], %s1008_s25  ;;  %p1845_p12 = scmp.ne.s32.totalorder %s1493_s19, 0 }
  0x6c   : > { %1057 = vmatpush3.bf16.msra.mxu0 %v1214_v1  ;;  %v1661_v6 = vshrl.u32 %v307_v5, 7  ;;  %v1663_v7 = vand.u32 127, %v307_v5  ;;  %vm316_vm3 = vcmask (!%p1845_p12), 64512   ;;  %v1429_v15 = vmov (!%p1845_p12), 0.0  }
  0x6d   : > { %1058 = vmatprep.subr.bf16.mxu0 %v1427_v0  ;;  %317 = vst.msk [vmem:[#allocation9] sm:$0xff] (!%p1845_p12), %vm316_vm3, %v1429_v15  ;;  %318 = vst.msk [vmem:[#allocation9 + $0x8] sm:$0xff] (!%p1845_p12), %vm316_vm3, %v1429_v15 }
  0x6e   : > { %vm311_vm2 = vcmp.le.s32.totalorder %v1663_v7, %v1661_v6  ;;  %319 = vst.msk [vmem:[#allocation9 + $0x10] sm:$0xff] (!%p1845_p12), %vm316_vm3, %v1429_v15  ;;  %320 = vst.msk [vmem:[#allocation9 + $0x18] sm:$0xff] (!%p1845_p12), %vm316_vm3, %v1429_v15 }
  0x70   : > { %1059 = vmatpush3.bf16.msra.mxu0 %v1215_v2 }
  0x73   : > { %1061 = vmatmul.mubr.msk.bf16.vlgmr.msra.gmra.mrb[0].mxu0 %vm260_vm1, %v243_v4 }
 0x143   : > { %315 = sbr.rel (%p1845_p12) target bundleno = 330 (0x14a), region = 48 }
 0x146   : > { %v298_v8 = vpop.f32.mrb[0].mxu0 }
 0x147   : > { %v304_v9 = vmul.f32 0.35355338, %v298_v8  ;;  %v1667_v10 = vpack.c.bf16 %v298_v8, %v298_v8  ;;  %v1062_v11 = vpop.f32.mrb[1].mxu0 }
 0x148   : > { %v301_v12 = vpop.f32.mrb[2].mxu0 }
 0x149   : > { %v305_v13 = vpack.c.bf16 %v304_v9, %v304_v9  ;;  %v1063_v14 = vpop.f32.mrb[3].mxu0 }
 0x14a PF: > { %1064 = vmatprep.subr.bf16.mxu1 %v1427_v0  ;;  %1066 = vmatprep.mubr.msk.bf16.mxu1 %vm1428_vm0, %v1427_v0  ;;  %s1430_s23 = smov 96   ;;  %s1431_s27 = smov 120   ;;  %vm324_vm4 = vcmask 64512   ;;  %v767_v12 = vld [vmem:[#allocation9] sm:$0xff]  ;;  %vm389_vm5 = vcmask 1043456   ;;  %vm792_vm6 = vcmask 130048  }
 0x14b   : > { %322 = vrot.lane.b32.xlu0 %v1667_v10, %s1430_s23  ;;  %1070 = vmatprep.subr.bf16.mxu0 %v1427_v0  ;;  %s1432_s30 = smov 88   ;;  %s1433_s5 = smov 80   ;;  %vm794_vm7 = vcmask 195584  }
 0x14c   : > { %434 = vrot.lane.b32.xlu1 %v305_v13, %s1431_s27  ;;  %1072 = vmatprep.mubr.msk.bf16.mxu0 %vm1428_vm0, %v1427_v0  ;;  %s1434_s6 = smov 112   ;;  %s1435_s26 = smov 72  }
 0x14d   : > { %s1436_s10 = smov 104   ;;  %s1437_s24 = smov 56  }
 0x14e   : > { %s1438_s20 = smov 64   ;;  %s1439_s28 = smov 40  }
 0x14f   : > { %436 = vrot.lane.b32.xlu0 %v1667_v10, %s1432_s30  ;;  %s1440_s11 = smov 48   ;;  %s1441_s12 = smov 8  }
 0x150   : > { %547 = vrot.lane.b32.xlu1 %v1667_v10, %s1433_s5  ;;  %s1442_s25 = smov 16   ;;  %s1443_s7 = smov 24  }
 0x151   : > { %p1027_p3 = scmp.ne.s32.totalorder %s1493_s19, 1 }
 0x153   : > { %545 = vrot.lane.b32.xlu0 %v305_v13, %s1434_s6 }
 0x154   : > { %658 = vrot.lane.b32.xlu1 %v1667_v10, %s1435_s26 }
 0x157   : > { %656 = vrot.lane.b32.xlu0 %v305_v13, %s1436_s10 }
 0x1bd   : > { %v323_v16 = vpop.permute.xlu0 %322 }
 0x1be   : > { %v329_v17 = vsel %vm324_vm4, %v323_v16, 0  ;;  %v435_v19 = vpop.permute.xlu1 %434 }
 0x1bf   : > { %1065 = vmatpush3.bf16.xpose.msra.mxu1 %v329_v17  ;;  %v768_v17 = vld [vmem:[#allocation9 + $0x8] sm:$0xff] }
 0x1c0   : > { %1076 = vmatprep.subr.bf16.mxu1 %v1427_v0 }
 0x1c1   : > { %v437_v18 = vpop.permute.xlu0 %436 }
 0x1c2   : > { %v442_v20 = vsel %vm324_vm4, %v437_v18, 0  ;;  %v548_v21 = vpop.permute.xlu1 %547 }
 0x1c3   : > { %v553_v22 = vsel %vm324_vm4, %v548_v21, 0 }
 0x1c5   : > { %v546_v24 = vpop.permute.xlu0 %545 }
 0x1c6   : > { %1067 = vmatmul.mubr.msk.bf16.vlgmr.msra.gmra.mrb[0].mxu1 %vm324_vm4, %v305_v13  ;;  %v659_v23 = vpop.permute.xlu1 %658 }
 0x1c7   : > { %1077 = vmatpush3.bf16.xpose.msra.mxu1 %v442_v20  ;;  %1078 = vmatprep.mubr.msk.bf16.mxu1 %vm1428_vm0, %v1427_v0  ;;  %v664_v25 = vsel %vm324_vm4, %v659_v23, 0 }
 0x1c8   : > { %1088 = vmatprep.subr.bf16.mxu1 %v1427_v0 }
 0x1c9   : > { %v657_v26 = vpop.permute.xlu0 %656 }
 0x1ce   : > { %1079 = vmatmul.mubr.msk.bf16.vlgmr.msra.gmra.mrb[4].mxu1 %vm324_vm4, %v435_v19 }
 0x1cf   : > { %1089 = vmatpush3.bf16.xpose.msra.mxu1 %v553_v22  ;;  %1090 = vmatprep.mubr.msk.bf16.mxu1 %vm1428_vm0, %v1427_v0 }
 0x1d0   : > { %1100 = vmatprep.subr.bf16.mxu1 %v1427_v0 }
 0x1d6   : > { %1091 = vmatmul.mubr.msk.bf16.vlgmr.msra.gmra.mrb[8].mxu1 %vm324_vm4, %v546_v24 }
 0x1d7   : > { %1101 = vmatpush3.bf16.xpose.msra.mxu1 %v664_v25  ;;  %1102 = vmatprep.mubr.msk.bf16.mxu1 %vm1428_vm0, %v1427_v0  ;;  %v769_v25 = vld [vmem:[#allocation9 + $0x10] sm:$0xff] }
 0x1d8   : > { %1112 = vmatprep.subr.bf16.mxu1 %v1427_v0 }
 0x1de   : > { %1103 = vmatmul.mubr.msk.bf16.vlgmr.msra.gmra.mrb[12].mxu1 %vm324_vm4, %v657_v26 }
 0x1df   : > { %1116 = vmatprep.mubr.msk.bf16.mxu1 %vm1428_vm0, %v1427_v0 }
 0x299   : > { %v365_v27 = vpop.f32.mrb[0].mxu1 }
 0x29a   : > { %v371_v28 = vsel %vm311_vm2, %v365_v27, -inf  ;;  %v1068_v29 = vpop.f32.mrb[1].mxu1 }
 0x29b   : > { %v368_v30 = vpop.f32.mrb[2].mxu1  ;;  %v372_v31 = vsel %vm324_vm4, %v371_v28, -inf }
 0x29c   : > { %373 = vmax.xlane.f32.xlu1 %v372_v31  ;;  %v1069_v32 = vpop.f32.mrb[3].mxu1 }
 0x2a1   : > { %v478_v33 = vpop.f32.mrb[4].mxu1 }
 0x2a2   : > { %v484_v34 = vsel %vm311_vm2, %v478_v33, -inf  ;;  %v1080_v35 = vpop.f32.mrb[5].mxu1 }
 0x2a3   : > { %v481_v36 = vpop.f32.mrb[6].mxu1  ;;  %v485_v37 = vsel %vm324_vm4, %v484_v34, -inf }
 0x2a4   : > { %486 = vmax.xlane.f32.xlu0 %v485_v37  ;;  %v1081_v38 = vpop.f32.mrb[7].mxu1  ;;  %v770_v36 = vld [vmem:[#allocation9 + $0x18] sm:$0xff] }
 0x2a9   : > { %v589_v39 = vpop.f32.mrb[8].mxu1 }
 0x2aa   : > { %v595_v40 = vsel %vm311_vm2, %v589_v39, -inf  ;;  %v1092_v41 = vpop.f32.mrb[9].mxu1 }
 0x2ab   : > { %v596_v42 = vsel %vm324_vm4, %v595_v40, -inf  ;;  %v592_v43 = vpop.f32.mrb[10].mxu1 }
 0x2ac   : > { %597 = vmax.xlane.f32.xlu0 %v596_v42  ;;  %v1093_v44 = vpop.f32.mrb[11].mxu1 }
 0x2b1   : > { %v700_v45 = vpop.f32.mrb[12].mxu1 }
 0x2b2   : > { %v706_v46 = vsel %vm311_vm2, %v700_v45, -inf  ;;  %v1104_v47 = vpop.f32.mrb[13].mxu1 }
 0x2b3   : > { %v707_v48 = vsel %vm324_vm4, %v706_v46, -inf  ;;  %v703_v49 = vpop.f32.mrb[14].mxu1 }
 0x2b4   : > { %708 = vmax.xlane.f32.xlu1 %v707_v48  ;;  %v1105_v50 = vpop.f32.mrb[15].mxu1  ;;  %v1216_v48 = vld [vmem:[#allocation7] sm:$0xff]   ;;  %v1217_v49 = vld [vmem:[#allocation7 + $0x8] sm:$0xff]  }
 0x2b5   : > { %1113 = vmatpush3.bf16.msra.mxu1 %v1216_v48 }
 0x2b6   : > { %1114 = vmatprep.subr.bf16.mxu1 %v1427_v0 }
 0x2b9   : > { %1115 = vmatpush3.bf16.msra.mxu1 %v1217_v49 }
 0x329   : > { %v374_v51 = vpop.xlane.xlu1 %373 }
 0x32a   : > { %v375_v52 = vsub.f32 %v371_v28, %v374_v51 }
 0x32c   : > { %v376_v53 = vmul.f32 1.442695, %v375_v52 }
 0x32e   : > { %1218 = vpow2.f32 %v376_v53 }
 0x331   : > { %v487_v54 = vpop.xlane.xlu0 %486 }
 0x332   : > { %v488_v55 = vsub.f32 %v484_v34, %v487_v54 }
 0x334   : > { %v489_v56 = vmul.f32 1.442695, %v488_v55 }
 0x336   : > { %1220 = vpow2.f32 %v489_v56 }
 0x338   : > { %v1219_v57 = vpop.eup %1218 }
 0x339   : > { %v598_v58 = vpop.xlane.xlu0 %597  ;;  %v378_v59 = vsel %vm324_vm4, %v1219_v57, 0.0 }
 0x33a   : > { %v599_v60 = vsub.f32 %v595_v40, %v598_v58  ;;  %379 = vadd.xlane.f32.xlu0 %v378_v59 }
 0x33c   : > { %v600_v61 = vmul.f32 1.442695, %v599_v60 }
 0x33e   : > { %1222 = vpow2.f32 %v600_v61 }
 0x340   : > { %v1221_v62 = vpop.eup %1220 }
 0x341   : > { %v491_v63 = vsel %vm324_vm4, %v1221_v62, 0.0  ;;  %v709_v3 = vpop.xlane.xlu1 %708 }
 0x342   : > { %492 = vadd.xlane.f32.xlu1 %v491_v63  ;;  %v710_v4 = vsub.f32 %v706_v46, %v709_v3 }
 0x344   : > { %v711_v5 = vmul.f32 1.442695, %v710_v4 }
 0x346   : > { %1224 = vpow2.f32 %v711_v5 }
 0x348   : > { %v1223_v1 = vpop.eup %1222 }
 0x349   : > { %v602_v2 = vsel %vm324_vm4, %v1223_v1, 0.0 }
 0x34a   : > { %603 = vadd.xlane.f32.xlu0 %v602_v2 }
 0x350   : > { %v1225_v6 = vpop.eup %1224 }
 0x351   : > { %v713_v7 = vsel %vm324_vm4, %v1225_v6, 0.0 }
 0x353   : > { %497 = vrot.lane.b32.xlu1 %v1667_v10, %s1437_s24 }
 0x360   : > { %384 = vrot.lane.b32.xlu0 %v1667_v10, %s1438_s20 }
 0x364   : > { %719 = vrot.lane.b32.xlu0 %v1667_v10, %s1439_s28 }
 0x377   : > { %714 = vadd.xlane.f32.xlu1 %v713_v7 }
 0x388   : > { %608 = vrot.lane.b32.xlu1 %v1667_v10, %s1440_s11 }
 0x3c7   : > { %v380_v8 = vpop.xlane.xlu0 %379 }
 0x3c8   : > { %1226 = vrcp.f32 %v380_v8 }
 0x3cf   : > { %v493_v9 = vpop.xlane.xlu1 %492 }
 0x3d0   : > { %1228 = vrcp.f32 %v493_v9 }
 0x3d2   : > { %v1227_v11 = vpop.eup %1226 }
 0x3d3   : > { %v382_v13 = vmul.f32 %v1227_v11, %v1219_v57  ;;  %v498_v21 = vpop.permute.xlu1 %497 }
 0x3d4   : > { %v503_v23 = vsel %vm389_vm5, %v498_v21, 0 }
 0x3d5   : > { %v771_v14 = vadd.f32 %v767_v12, %v382_v13  ;;  %v383_v22 = vpack.c.bf16 %v382_v13, %v382_v13 }
 0x3d7   : > { %v604_v15 = vpop.xlane.xlu0 %603  ;;  %775 = vst.msk [vmem:[#allocation9] sm:$0xff] %vm324_vm4, %v771_v14 }
 0x3d8   : > { %1230 = vrcp.f32 %v604_v15 }
 0x3da   : > { %v1229_v16 = vpop.eup %1228 }
 0x3db   : > { %v495_v18 = vmul.f32 %v1229_v16, %v1221_v62  ;;  %v385_v19 = vpop.permute.xlu0 %384 }
 0x3dc   : > { %v391_v20 = vsel %vm389_vm5, %v385_v19, 0 }
 0x3dd   : > { %v772_v10 = vadd.f32 %v768_v17, %v495_v18  ;;  %1071 = vmatpush3.bf16.msra.mxu0 %v391_v20  ;;  %v496_v28 = vpack.c.bf16 %v495_v18, %v495_v18 }
 0x3de   : > { %1082 = vmatprep.subr.bf16.mxu0 %v1427_v0  ;;  %v861_v5 = vld [vmem:[#allocation9] sm:$0xff] (!%p1027_p3) }
 0x3df   : > { %776 = vst.msk [vmem:[#allocation9 + $0x8] sm:$0xff] %vm324_vm4, %v772_v10  ;;  %v720_v31 = vpop.permute.xlu0 %719  ;;  %v865_v8 = vmul.f32 (!%p1027_p3), 0.5, %v861_v5 }
 0x3e0   : > { %1073 = vmatmul.mubr.msk.bf16.vlgmr.msra.gmra.mrb[4].mxu0 %vm324_vm4, %v383_v22  ;;  %v725_v34 = vsel %vm389_vm5, %v720_v31, 0 }
 0x3e1   : > { %1083 = vmatpush3.bf16.msra.mxu0 %v503_v23  ;;  %1084 = vmatprep.mubr.msk.bf16.mxu0 %vm1428_vm0, %v1427_v0  ;;  %869 = vst.msk [vmem:[#allocation9] sm:$0xff] (!%p1027_p3), %vm324_vm4, %v865_v8 }
 0x3e2   : > { %v1231_v24 = vpop.eup %1230  ;;  %1094 = vmatprep.subr.bf16.mxu0 %v1427_v0 }
 0x3e3   : > { %v606_v26 = vmul.f32 %v1231_v24, %v1223_v1 }
 0x3e5   : > { %v773_v27 = vadd.f32 %v769_v25, %v606_v26  ;;  %v607_v33 = vpack.c.bf16 %v606_v26, %v606_v26 }
 0x3e7   : > { %777 = vst.msk [vmem:[#allocation9 + $0x10] sm:$0xff] %vm324_vm4, %v773_v27 }
 0x3e8   : > { %1085 = vmatmul.mubr.msk.bf16.vlgmr.msra.gmra.mrb[8].mxu0 %vm324_vm4, %v496_v28 }
 0x3e9   : > { %1096 = vmatprep.mubr.msk.bf16.mxu0 %vm1428_vm0, %v1427_v0 }
 0x3ee   : > { %v863_v7 = vld [vmem:[#allocation9 + $0x10] sm:$0xff] (!%p1027_p3) }
 0x3ef   : > { %v867_v11 = vmul.f32 (!%p1027_p3), 0.5, %v863_v7 }
 0x3f1   : > { %871 = vst.msk [vmem:[#allocation9 + $0x10] sm:$0xff] (!%p1027_p3), %vm324_vm4, %v867_v11 }
 0x404   : > { %v715_v29 = vpop.xlane.xlu1 %714 }
 0x405   : > { %1232 = vrcp.f32 %v715_v29 }
 0x408   : > { %v609_v30 = vpop.permute.xlu1 %608 }
 0x409   : > { %v614_v32 = vsel %vm389_vm5, %v609_v30, 0 }
 0x40a   : > { %1095 = vmatpush3.bf16.msra.mxu0 %v614_v32 }
 0x40b   : > { %1106 = vmatprep.subr.bf16.mxu0 %v1427_v0 }
 0x40d   : > { %1097 = vmatmul.mubr.msk.bf16.vlgmr.msra.gmra.mrb[12].mxu0 %vm324_vm4, %v607_v33 }
 0x40e   : > { %1107 = vmatpush3.bf16.msra.mxu0 %v725_v34  ;;  %1108 = vmatprep.mubr.msk.bf16.mxu0 %vm1428_vm0, %v1427_v0 }
 0x40f   : > { %v1233_v35 = vpop.eup %1232 }
 0x410   : > { %v717_v37 = vmul.f32 %v1233_v35, %v1225_v6  ;;  %v862_v6 = vld [vmem:[#allocation9 + $0x8] sm:$0xff] (!%p1027_p3) }
 0x411   : > { %v866_v9 = vmul.f32 (!%p1027_p3), 0.5, %v862_v6 }
 0x412   : > { %v774_v38 = vadd.f32 %v770_v36, %v717_v37  ;;  %v718_v39 = vpack.c.bf16 %v717_v37, %v717_v37 }
 0x413   : > { %870 = vst.msk [vmem:[#allocation9 + $0x8] sm:$0xff] (!%p1027_p3), %vm324_vm4, %v866_v9 }
 0x414   : > { %778 = vst.msk [vmem:[#allocation9 + $0x18] sm:$0xff] %vm324_vm4, %v774_v38 }
 0x415   : > { %1109 = vmatmul.mubr.msk.bf16.vlgmr.msra.gmra.mrb[16].mxu0 %vm324_vm4, %v718_v39 }
 0x41b   : > { %v864_v12 = vld [vmem:[#allocation9 + $0x18] sm:$0xff] (!%p1027_p3) }
 0x41c   : > { %v868_v13 = vmul.f32 (!%p1027_p3), 0.5, %v864_v12 }
 0x41e   : > { %872 = vst.msk [vmem:[#allocation9 + $0x18] sm:$0xff] (!%p1027_p3), %vm324_vm4, %v868_v13 }
 0x4b3   : > { %v427_v40 = vpop.f32.mrb[4].mxu0 }
 0x4b4   : > { %v1074_v41 = vpop.f32.mrb[5].mxu0 }
 0x4b5   : > { %v430_v42 = vpop.f32.mrb[6].mxu0 }
 0x4b6   : > { %v1075_v43 = vpop.f32.mrb[7].mxu0 }
 0x4bb   : > { %v539_v44 = vpop.f32.mrb[8].mxu0 }
 0x4bc   : > { %780 = vrot.lane.b32.xlu1 %v539_v44, %s1441_s12  ;;  %v1086_v45 = vpop.f32.mrb[9].mxu0 }
 0x4bd   : > { %v542_v46 = vpop.f32.mrb[10].mxu0 }
 0x4be   : > { %v1087_v47 = vpop.f32.mrb[11].mxu0 }
 0x4e0   : > { %v650_v50 = vpop.f32.mrb[12].mxu0 }
 0x4e1   : > { %784 = vrot.lane.b32.xlu0 %v650_v50, %s1442_s25  ;;  %v1098_v51 = vpop.f32.mrb[13].mxu0 }
 0x4e2   : > { %v653_v52 = vpop.f32.mrb[14].mxu0 }
 0x4e3   : > { %v1099_v53 = vpop.f32.mrb[15].mxu0 }
 0x4e8   : > { %v761_v54 = vpop.f32.mrb[16].mxu0 }
 0x4e9   : > { %788 = vrot.lane.b32.xlu1 %v761_v54, %s1443_s7  ;;  %v1110_v55 = vpop.f32.mrb[17].mxu0 }
 0x4ea   : > { %v764_v56 = vpop.f32.mrb[18].mxu0 }
 0x4eb   : > { %v1111_v57 = vpop.f32.mrb[19].mxu0 }
 0x52e   : > { %v781_v58 = vpop.permute.xlu1 %780 }
 0x52f   : > { %v791_v0 = vsel %vm324_vm4, %v427_v40, %v781_v58 }
 0x553   : > { %v785_v59 = vpop.permute.xlu0 %784 }
 0x554   : > { %v793_v60 = vsel %vm792_vm6, %v791_v0, %v785_v59 }
 0x55b   : > { %v789_v61 = vpop.permute.xlu1 %788 }
 0x55c   : > { %v795_v62 = vsel %vm794_vm7, %v793_v60, %v789_v61 }
 0x55d   : > { %v796_v63 = vpack.c.bf16 %v795_v62, %v795_v62 }
 0x55f   : > { %1117 = vmatmul.mubr.msk.bf16.vlgmr.msra.gmra.mrb[16].mxu1 %vm260_vm1, %v796_v63 }
 0x62f   : > { %860 = sbr.rel (%p1027_p3) target bundleno = 1590 (0x636), region = 52 }
 0x632   : > { %v850_v1 = vpop.f32.mrb[16].mxu1 }
 0x633   : > { %856 = vst.msk [vmem:[%s1671_s21] sm:$0xff] %vm260_vm1, %v850_v1  ;;  %v1118_v2 = vpop.f32.mrb[17].mxu1 }
 0x634   : > { %v853_v3 = vpop.f32.mrb[18].mxu1 }
 0x635   : > { %v1119_v4 = vpop.f32.mrb[19].mxu1 }
 0x636 PF: > { %s1029_s8 = sshll.u32 %s1493_s19, 7  ;;  %s887_s5 = sshll.u32 %s1671_s21, 4  ;;  %s888_s5 = int_to_ptr.vmem [resolvable:$true] %s887_s5 }
 0x637   : > { %s1765_s30 = scalar_lea.hbm %s1830_s3, %s1029_s8  ;;  %s874_s6 = scalar_lea.sflag [#allocation4], %s1642_s29 }
 0x638   : > { %s1320_s26 = scalar_lea.vmem %s888_s5, 128  ;;  %p1846_p11 = scmp.ne.s32.totalorder %s1840_s13, 0 }
 0x639   : > { %p1321_p1 = scmp.ne.s32.totalorder %s888_s5, %s1320_s26  ;;  %s1444_s10 = smov [#allocation8]  }
 0x63a   : > { %s1324_s24 = sshll.u32 %s1444_s10, 4  ;;  %s1325_s24 = int_to_ptr.vmem [resolvable:$false] %s1324_s24 }
 0x63b   : > { %p1322_p7 = pnand %p1321_p1, %p1846_p11  ;;  %s1326_s20 = scalar_lea.vmem %s1325_s24, 256 }
 0x63c   : > { %p1327_p13 = scmp.lt.s32.totalorder %s888_s5, %s1325_s24  ;;  %p1328_p2 = scmp.lt.s32.totalorder %s1326_s20, %s1320_s26 }
 0x63d   : > { %p1323_p10 = pneg %p1322_p7 }
 0x63e   : > { %p1329_p0 = por %p1328_p2, %p1327_p13 }
 0x640   : > { %p1330_p6 = pnand %p1329_p0, %p1323_p10 }
 0x642   : > { %1333 = shalt.err (!%p1330_p6)
}
 0x643   : > { %s1334_s29 = scalar_lea.hbm %s1765_s30, 128  ;;  %s1338_s11 = scalar_lea.hbm %s1830_s3, 256 }
 0x644   : > { %p1335_p8 = scmp.ne.s32.totalorder %s1765_s30, %s1334_s29  ;;  %p1339_p9 = scmp.lt.u32.totalorder %s1765_s30, %s1830_s3 }
 0x645   : > { %p1340_p12 = scmp.lt.u32.totalorder %s1338_s11, %s1334_s29  ;;  %p1342_p1 = scmp.lt.u32.totalorder %s1334_s29, %s1765_s30 }
 0x646   : > { %p1336_p4 = pnand %p1335_p8, %p1846_p11 }
 0x647   : > { %p1341_p3 = por %p1340_p12, %p1339_p9 }
 0x648   : > { %p1337_p5 = pneg %p1336_p4 }
 0x649   : > { %p1343_p7 = por %p1342_p1, %p1341_p3 }
 0x64b   : > { %p1344_p10 = pnand %p1343_p7, %p1337_p5 }
 0x64d   : > { %1347 = shalt.err (!%p1344_p10)
}
 0x64e   : > { %1130 = dma.vmem_to_hbm [thread:$0]  (%p1846_p11), %s888_s5, 128, %s1765_s30, %s874_s6  }
 0x64f   : > { %s1445_s8 = smov [#allocation9]   ;;  %p1847_p2 = scmp.eq.s32.totalorder %s1493_s19, 1 }
 0x650   : > { %s897_s23 = sshll.u32 %s1445_s8, 4  ;;  %s898_s23 = int_to_ptr.vmem [resolvable:$true] %s897_s23 }
 0x651   : > { %s1348_s27 = scalar_lea.vmem %s898_s23, 512  ;;  %p1355_p8 = scmp.lt.s32.totalorder %s898_s23, %s898_s23 }
 0x652   : > { %p1349_p13 = scmp.ne.s32.totalorder %s898_s23, %s1348_s27  ;;  %p1356_p4 = scmp.lt.s32.totalorder %s1348_s27, %s1348_s27 }
 0x654   : > { %p1350_p0 = pnand %p1349_p13, %p1847_p2  ;;  %p1357_p9 = por %p1356_p4, %p1355_p8 }
 0x656   : > { %p1351_p6 = pneg %p1350_p0 }
 0x658   : > { %p1358_p12 = pnand %p1357_p9, %p1351_p6 }
 0x65a   : > { %1361 = shalt.err (!%p1358_p12)
}
 0x65b   : > { %s1362_s13 = scalar_lea.hbm %s1831_s4, 512  ;;  %p1848_p5 = pmov %p1847_p2 }
 0x65c   : > { %p1363_p11 = scmp.ne.s32.totalorder %s1831_s4, %s1362_s13  ;;  %p1368_p7 = scmp.lt.u32.totalorder %s1362_s13, %s1831_s4 }
 0x65e   : > { %p1364_p3 = pnand %p1363_p11, %p1848_p5 }
 0x660   : > { %p1365_p1 = pneg %p1364_p3 }
 0x662   : > { %p1370_p10 = pnand %p1368_p7, %p1365_p1 }
 0x664   : > { %1373 = shalt.err (!%p1370_p10)
}
 0x665   : > { %s1446_s20 = smov 128   ;;  %p1849_p13 = pmov %p1847_p2 }
 0x667   : > { %1132 = dma.vmem_to_hbm [thread:$0]  (%p1849_p13), %s898_s23, 512, %s1831_s4, [#allocation10], %s1446_s20, %s1446_s20, %s1441_s12  }
 0x668   : > { %1399 = dma.done.wait (%p1847_p2), [#allocation10], 512   ;;  %p1850_p0 = pmov %p1847_p2 }
 0x66a   : > { %1401 = vsyncadd (%p1850_p0), [#allocation10], 4294966784 }
 0x66b PF: > { %s916_s28 = sand.u32 1, %s1408_s15   ;;  %p1851_p6 = scmp.ne.s32.totalorder %s1836_s22, 0 }
 0x66c   : > { %p1852_p8 = scmp.ge.s32.totalorder %s1420_s18, 2  ;;  %s917_s11 = scalar_lea.sflag [#allocation4], %s916_s28 }
 0x66e   : > { %p1148_p4 = pnand %p1852_p8, %p1851_p6 }
 0x670   : > { %1403 = dma.done.wait (!%p1148_p4), %s917_s11, 128  }
 0x671   : > { %1405 = vsyncadd (!%p1148_p4), %s917_s11, 4294967168  ;;  %p20_p9 = scmp.ge.s32.totalorder %s1583_s9, 4   ;;  %s1853_s15 = smov %s1412_s16 }
 0x672   : > { %s1854_s16 = smov %s1416_s17  ;;  %s1855_s17 = smov %s1599_s14 }
 0x673   : > { %s1856_s18 = smov %s1583_s9  ;;  %22 = sbr.rel (!%p20_p9) target bundleno = 7 (0x7), region = 101 }
 0x67a   :  { %922 = vsyncpa [#allocation3], 1 }
 0x67b   :  { %924 = vsyncpa [#allocation3 + $0x1], 1 }
 0x67c   :  { %925 = vsyncpa [#allocation6], 1 }
 0x67d   :  { %926 = vsyncpa [#allocation4], 1 }
 0x67e   :  { %928 = vsyncpa [#allocation4 + $0x1], 1 }
 0x67f   :  { %929 = vsyncpa [#allocation10], 1 }

</bundles_post_ra>
